<compile_context>
chip_gen: v5e
topology: v5e:2x2
jax: 0.10.0
libtpu: 0.0.40
codegen_flags: <defaults>
</compile_context>

<pallas_src>
import jax
import jax.numpy as jnp
from jax.experimental import pallas as pl
from jax.experimental.pallas import tpu as pltpu

_LANE = 128      # lane quantum (last dim)
_SUBLANE = 8     # sublane quantum (second-to-last dim)


def _round_up(x: int, m: int) -> int:
    return ((x + m - 1) // m) * m


def _cdiv(a: int, b: int) -> int:
    return -(-a // b)


def _make_resfnn_kernel(num_blocks, residual_flags, matmul_dtype):
    """Fused kernel: all ResidualBlocks + the output Linear in one body."""

    def kernel(*refs):
        # refs: alphas (SMEM), x tile, (w, b) x (num_blocks + 1), out tile
        alphas_ref = refs[0]
        x_ref = refs[1]
        wb_refs = refs[2:2 + 2 * (num_blocks + 1)]
        out_ref = refs[-1]

        h = x_ref[...].astype(jnp.float32)                       # (bm, d) f32
        for i in range(num_blocks):                              # static unroll
            w = wb_refs[2 * i][...]                              # bf16 (or f32)
            b = wb_refs[2 * i + 1][...]                          # f32
            # MXU matmul: bf16 operands, f32 accumulation.
            y = jnp.dot(h.astype(matmul_dtype), w,
                        preferred_element_type=jnp.float32) + b
            a = alphas_ref[i]                                    # PReLU scalar
            y = jnp.where(y > 0.0, y, a * y)                     # PReLU (f32 VPU)
            if residual_flags[i]:                                # static check
                y = h + y
            h = y
        w = wb_refs[2 * num_blocks][...]
        b = wb_refs[2 * num_blocks + 1][...]
        out = jnp.dot(h.astype(matmul_dtype), w,
                      preferred_element_type=jnp.float32) + b
        out_ref[...] = out.astype(out_ref.dtype)

    return kernel


def resfnn_forward(x, weights, biases, alphas, *, flatten=False,
                   block_m=512, matmul_dtype=jnp.bfloat16):
    """ResFNN forward.

    x:       (..., input_dim) (with flatten=True: (B, ...) -> (B, -1)).
    weights: list of (d_in_i, d_out_i); last entry is the output Linear.
    biases:  list of (d_out_i,), same order.
    alphas:  (num_blocks,) -- PReLU slope per ResidualBlock.
    """
    if flatten:
        x = x.reshape(x.shape[0], -1)
    lead_shape = x.shape[:-1]
    out_dtype = x.dtype
    d_in = int(x.shape[-1])
    d_out = int(weights[-1].shape[1])
    num_blocks = len(weights) - 1
    residual_flags = tuple(int(w.shape[0]) == int(w.shape[1])
                           for w in weights[:-1])

    # ---- lane-pad every layer width to a multiple of 128 (zero padding is
    # exact for Linear+PReLU+residual, see header comment) ----
    dims = [d_in] + [int(w.shape[1]) for w in weights]
    dims_pad = [_round_up(d, _LANE) for d in dims]
    d_in_pad, d_out_pad = dims_pad[0], dims_pad[-1]

    # Flatten all leading axes into one fused row axis M (nn.Linear is per-row).
    x2 = x.reshape(-1, d_in).astype(jnp.float32)
    m = int(x2.shape[0])
    if d_in_pad != d_in:
        x2 = jnp.pad(x2, ((0, 0), (0, d_in_pad - d_in)))

    # ---- balanced row tiling (minimal sublane padding, not up to a fixed bm) ----
    num_tiles = max(1, _cdiv(m, block_m))
    if num_tiles == 1 and m >= 512:
        num_tiles = 2            # v7x: give both TensorCores a row tile
    bm = _round_up(_cdiv(m, num_tiles), _SUBLANE)
    m_pad = bm * num_tiles
    if m_pad != m:
        x2 = jnp.pad(x2, ((0, m_pad - m), (0, 0)))

    # ---- padded, dtype-cast layer parameters ----
    layer_ws, layer_bs = [], []
    for i, (w, b) in enumerate(zip(weights, biases)):
        kp, npd = dims_pad[i], dims_pad[i + 1]
        w = jnp.pad(jnp.asarray(w, jnp.float32),
                    ((0, kp - w.shape[0]), (0, npd - w.shape[1])))
        b = jnp.pad(jnp.asarray(b, jnp.float32), (0, npd - b.shape[0]))
        layer_ws.append(w.astype(matmul_dtype))   # bf16 weights -> MXU native
        layer_bs.append(b.reshape(1, -1))         # f32 bias row (1, npd)

    # PReLU scalars live in SMEM (one tiny vector for the whole network).
    alphas_arr = jnp.asarray(alphas, jnp.float32).reshape(-1)
    if alphas_arr.size == 0:                      # no hidden layers: dummy scalar
        alphas_arr = jnp.zeros((1,), jnp.float32)

    operands = [alphas_arr, x2]
    for w, b in zip(layer_ws, layer_bs):
        operands += [w, b]

    def build_in_specs(single_buffer_weights):
        specs = [
            pl.BlockSpec(memory_space=pltpu.MemorySpace.SMEM),   # PReLU alphas
            pl.BlockSpec((bm, d_in_pad), lambda i: (i, 0)),      # x row tile
        ]
        for w, b in zip(layer_ws, layer_bs):
            if single_buffer_weights:
                # Constant index_map -> block never changes; one buffer suffices.
                specs.append(pl.BlockSpec(w.shape, lambda i: (0, 0),
                                          pipeline_mode=pl.Buffered(1)))
                specs.append(pl.BlockSpec(b.shape, lambda i: (0, 0),
                                          pipeline_mode=pl.Buffered(1)))
            else:
                specs.append(pl.BlockSpec(w.shape, lambda i: (0, 0)))
                specs.append(pl.BlockSpec(b.shape, lambda i: (0, 0)))
        return specs

    # ---- VMEM budget and cost estimate ----
    w_itemsize = jnp.dtype(matmul_dtype).itemsize
    out_itemsize = jnp.dtype(out_dtype).itemsize
    x_bytes = bm * d_in_pad * 4
    out_bytes = bm * d_out_pad * out_itemsize
    wb_bytes = sum(int(w.size) * w_itemsize + int(b.size) * 4
                   for w, b in zip(layer_ws, layer_bs))
    need = 2 * (x_bytes + out_bytes) + 2 * wb_bytes + (4 << 20)  # generous
    vmem_limit = int(min(max(need, 32 << 20), 128 << 20))

    flops = 2 * m_pad * sum(dims_pad[i] * dims_pad[i + 1]
                            for i in range(len(dims_pad) - 1))
    bytes_accessed = m_pad * d_in_pad * 4 + m_pad * d_out_pad * out_itemsize + wb_bytes
    cost = pl.CostEstimate(flops=int(flops), transcendentals=0,
                           bytes_accessed=int(bytes_accessed))

    kernel = _make_resfnn_kernel(num_blocks, residual_flags, matmul_dtype)

    def call(single_buffer_weights):
        return pl.pallas_call(
            kernel,
            out_shape=jax.ShapeDtypeStruct((m_pad, d_out_pad), out_dtype),
            grid_spec=pl.GridSpec(
                grid=(num_tiles,),
                in_specs=build_in_specs(single_buffer_weights),
                out_specs=pl.BlockSpec((bm, d_out_pad), lambda i: (i, 0)),
            ),
            compiler_params=pltpu.CompilerParams(
                dimension_semantics=("parallel",),
                vmem_limit_bytes=vmem_limit,
            ),
            cost_estimate=cost,
        )(*operands)

    try:
        out = call(True)        # single-buffered resident weights (saves VMEM)
    except Exception:
        # Fallback if this JAX build rejects pipeline_mode=pl.Buffered(1);
        # identical results, default double-buffered weight blocks.
        out = call(False)

    return out[:m, :d_out].reshape(*lead_shape, d_out)


def _resfnn_ref(x, weights, biases, alphas, *, flatten=False, matmul_dtype=None):
    """Pure-JAX reference with identical semantics.

    matmul_dtype=None  -> full-f32 HIGHEST-precision matmuls (PyTorch spec).
    matmul_dtype=bf16  -> mirrors the kernel's matmul numerics (f32 accumulate).
    """
    if flatten:
        x = x.reshape(x.shape[0], -1)
    hp = jax.lax.Precision.HIGHEST

    def dot(a, w):
        if matmul_dtype is None:
            return jnp.dot(a, w, precision=hp)
        return jnp.dot(a.astype(matmul_dtype), w.astype(matmul_dtype),
                       preferred_element_type=jnp.float32)

    h = x.astype(jnp.float32)
    for i in range(len(weights) - 1):
        y = dot(h, weights[i]) + biases[i]
        y = jnp.where(y > 0.0, y, alphas[i] * y)
        if weights[i].shape[0] == weights[i].shape[1]:
            y = h + y
        h = y
    return dot(h, weights[-1]) + biases[-1]


if __name__ == "__main__":
    # Small shapes consistent with the module.
    batch, seq = 2, 8
    input_dim, hidden_dims, output_dim = 32, (32, 32), 4

    key = jax.random.PRNGKey(0)
    keys = jax.random.split(key, 2 * (len(hidden_dims) + 1) + 1)

    x = jax.random.normal(keys[0], (batch, seq, input_dim), dtype=jnp.float32)

    dims = [input_dim] + list(hidden_dims) + [output_dim]
    weights, biases = [], []
    for li in range(len(dims) - 1):
        kw, kb = keys[1 + 2 * li], keys[2 + 2 * li]
        weights.append(
            jax.random.normal(kw, (dims[li], dims[li + 1]), dtype=jnp.float32)
            * (1.0 / float(dims[li]) ** 0.5)
        )
        biases.append(
            jax.random.normal(kb, (dims[li + 1],), dtype=jnp.float32) * 0.01
        )
    # nn.PReLU() default init: a = 0.25 per ResidualBlock.
    alphas = jnp.full((len(hidden_dims),), 0.25, dtype=jnp.float32)

    out = resfnn_forward(x, weights, biases, alphas, flatten=False)
    out = jax.block_until_ready(out)
    assert out.shape == (batch, seq, output_dim), out.shape

    # Implementation fidelity: reference with the same bf16-matmul numerics.
    ref_mixed = _resfnn_ref(x, weights, biases, alphas, flatten=False,
                            matmul_dtype=jnp.bfloat16)
    err_mixed = float(jnp.max(jnp.abs(out - ref_mixed)))
    assert jnp.allclose(out, ref_mixed, atol=5e-3, rtol=5e-3), err_mixed

    # Spec fidelity: full-f32 PyTorch-equivalent reference (bounds bf16 drift).
    ref_f32 = _resfnn_ref(x, weights, biases, alphas, flatten=False)
    err_f32 = float(jnp.max(jnp.abs(out - ref_f32)))
    assert jnp.allclose(out, ref_f32, atol=2e-2, rtol=2e-2), err_f32

    print("KERNEL_OK")
</pallas_src>

<mosaic_0001>
module attributes {stable_mosaic.version = 11 : i64} {
  func.func @kernel(%arg0: i32, %arg1: memref<2xf32, #tpu.memory_space<smem>>, %arg2: memref<16x128xf32, #tpu.memory_space<vmem>>, %arg3: memref<128x128xbf16, #tpu.memory_space<vmem>>, %arg4: memref<1x128xf32, #tpu.memory_space<vmem>>, %arg5: memref<128x128xbf16, #tpu.memory_space<vmem>>, %arg6: memref<1x128xf32, #tpu.memory_space<vmem>>, %arg7: memref<128x128xbf16, #tpu.memory_space<vmem>>, %arg8: memref<1x128xf32, #tpu.memory_space<vmem>>, %arg9: memref<16x128xf32, #tpu.memory_space<vmem>>) attributes {dimension_semantics = [#tpu.dimension_semantics<parallel>], iteration_bounds = array<i64: 1>, scalar_prefetch = 0 : i64, scratch_operands = 0 : i64, tpu.core_type = #tpu.core_type<tc>, window_params = [{transform_indices = @transform_0, window_bounds = array<i64: 2>}, {transform_indices = @transform_1, window_bounds = array<i64: 16, 128>}, {pipeline_mode = #tpu.pipeline_mode<synchronous>, transform_indices = @transform_2, window_bounds = array<i64: 128, 128>}, {pipeline_mode = #tpu.pipeline_mode<synchronous>, transform_indices = @transform_3, window_bounds = array<i64: 1, 128>}, {pipeline_mode = #tpu.pipeline_mode<synchronous>, transform_indices = @transform_4, window_bounds = array<i64: 128, 128>}, {pipeline_mode = #tpu.pipeline_mode<synchronous>, transform_indices = @transform_5, window_bounds = array<i64: 1, 128>}, {pipeline_mode = #tpu.pipeline_mode<synchronous>, transform_indices = @transform_6, window_bounds = array<i64: 128, 128>}, {pipeline_mode = #tpu.pipeline_mode<synchronous>, transform_indices = @transform_7, window_bounds = array<i64: 1, 128>}, {transform_indices = @transform_8, window_bounds = array<i64: 16, 128>}]} {
    %c0 = arith.constant 0 : index
    %c0_0 = arith.constant 0 : index
    %0 = vector.load %arg2[%c0, %c0_0] : memref<16x128xf32, #tpu.memory_space<vmem>>, vector<16x128xf32>
    %c0_1 = arith.constant 0 : index
    %c0_2 = arith.constant 0 : index
    %1 = vector.load %arg3[%c0_1, %c0_2] : memref<128x128xbf16, #tpu.memory_space<vmem>>, vector<128x128xbf16>
    %c0_3 = arith.constant 0 : index
    %c0_4 = arith.constant 0 : index
    %2 = vector.load %arg4[%c0_3, %c0_4] : memref<1x128xf32, #tpu.memory_space<vmem>>, vector<1x128xf32>
    %3 = arith.truncf %0 : vector<16x128xf32> to vector<16x128xbf16>
    %cst = arith.constant dense<0.000000e+00> : vector<16x128xf32>
    %4 = tpu.matmul %3, %1, %cst {dimension_numbers = #tpu.dot_dimension_numbers<[1], [0], [0], [1], [0, 0, 1, 1], [], []>} : vector<16x128xbf16>, vector<128x128xbf16>, vector<16x128xf32> -> vector<16x128xf32>
    %5 = vector.broadcast %2 : vector<1x128xf32> to vector<16x128xf32>
    %6 = arith.addf %4, %5 : vector<16x128xf32>
    %c0_5 = arith.constant 0 : index
    %7 = memref.load %arg1[%c0_5] : memref<2xf32, #tpu.memory_space<smem>>
    %cst_6 = arith.constant 0.000000e+00 : f32
    %8 = vector.broadcast %cst_6 : f32 to vector<16x128xf32>
    %9 = arith.cmpf ogt, %6, %8 : vector<16x128xf32>
    %10 = vector.broadcast %7 : f32 to vector<16x128xf32>
    %11 = arith.mulf %10, %6 : vector<16x128xf32>
    %12 = arith.select %9, %6, %11 : vector<16x128xi1>, vector<16x128xf32>
    %13 = arith.addf %0, %12 : vector<16x128xf32>
    %c0_7 = arith.constant 0 : index
    %c0_8 = arith.constant 0 : index
    %14 = vector.load %arg5[%c0_7, %c0_8] : memref<128x128xbf16, #tpu.memory_space<vmem>>, vector<128x128xbf16>
    %c0_9 = arith.constant 0 : index
    %c0_10 = arith.constant 0 : index
    %15 = vector.load %arg6[%c0_9, %c0_10] : memref<1x128xf32, #tpu.memory_space<vmem>>, vector<1x128xf32>
    %16 = arith.truncf %13 : vector<16x128xf32> to vector<16x128xbf16>
    %cst_11 = arith.constant dense<0.000000e+00> : vector<16x128xf32>
    %17 = tpu.matmul %16, %14, %cst_11 {dimension_numbers = #tpu.dot_dimension_numbers<[1], [0], [0], [1], [0, 0, 1, 1], [], []>} : vector<16x128xbf16>, vector<128x128xbf16>, vector<16x128xf32> -> vector<16x128xf32>
    %18 = vector.broadcast %15 : vector<1x128xf32> to vector<16x128xf32>
    %19 = arith.addf %17, %18 : vector<16x128xf32>
    %c1 = arith.constant 1 : index
    %20 = memref.load %arg1[%c1] : memref<2xf32, #tpu.memory_space<smem>>
    %cst_12 = arith.constant 0.000000e+00 : f32
    %21 = vector.broadcast %cst_12 : f32 to vector<16x128xf32>
    %22 = arith.cmpf ogt, %19, %21 : vector<16x128xf32>
    %23 = vector.broadcast %20 : f32 to vector<16x128xf32>
    %24 = arith.mulf %23, %19 : vector<16x128xf32>
    %25 = arith.select %22, %19, %24 : vector<16x128xi1>, vector<16x128xf32>
    %26 = arith.addf %13, %25 : vector<16x128xf32>
    %c0_13 = arith.constant 0 : index
    %c0_14 = arith.constant 0 : index
    %27 = vector.load %arg7[%c0_13, %c0_14] : memref<128x128xbf16, #tpu.memory_space<vmem>>, vector<128x128xbf16>
    %c0_15 = arith.constant 0 : index
    %c0_16 = arith.constant 0 : index
    %28 = vector.load %arg8[%c0_15, %c0_16] : memref<1x128xf32, #tpu.memory_space<vmem>>, vector<1x128xf32>
    %29 = arith.truncf %26 : vector<16x128xf32> to vector<16x128xbf16>
    %cst_17 = arith.constant dense<0.000000e+00> : vector<16x128xf32>
    %30 = tpu.matmul %29, %27, %cst_17 {dimension_numbers = #tpu.dot_dimension_numbers<[1], [0], [0], [1], [0, 0, 1, 1], [], []>} : vector<16x128xbf16>, vector<128x128xbf16>, vector<16x128xf32> -> vector<16x128xf32>
    %31 = vector.broadcast %28 : vector<1x128xf32> to vector<16x128xf32>
    %32 = arith.addf %30, %31 : vector<16x128xf32>
    %c0_18 = arith.constant 0 : index
    %c0_19 = arith.constant 0 : index
    %33 = vector.load %arg9[%c0_18, %c0_19] : memref<16x128xf32, #tpu.memory_space<vmem>>, vector<16x128xf32>
    tpu.vector_store %arg9[%c0_18, %c0_19], %32 {strides = array<i32>} : memref<16x128xf32, #tpu.memory_space<vmem>>, vector<16x128xf32>,
    return
  }
  func.func @transform_0(%arg0: i32) -> i32 {
    %c0_i32 = arith.constant 0 : i32
    %c0_i32_0 = arith.constant 0 : i32
    return %c0_i32 : i32
  }
  func.func @transform_1(%arg0: i32) -> (i32, i32) {
    %c0_i32 = arith.constant 0 : i32
    %c0_i32_0 = arith.constant 0 : i32
    return %arg0, %c0_i32 : i32, i32
  }
  func.func @transform_2(%arg0: i32) -> (i32, i32) {
    %c0_i32 = arith.constant 0 : i32
    %c0_i32_0 = arith.constant 0 : i32
    %c0_i32_1 = arith.constant 0 : i32
    return %c0_i32, %c0_i32_0 : i32, i32
  }
  func.func @transform_3(%arg0: i32) -> (i32, i32) {
    %c0_i32 = arith.constant 0 : i32
    %c0_i32_0 = arith.constant 0 : i32
    %c0_i32_1 = arith.constant 0 : i32
    return %c0_i32, %c0_i32_0 : i32, i32
  }
  func.func @transform_4(%arg0: i32) -> (i32, i32) {
    %c0_i32 = arith.constant 0 : i32
    %c0_i32_0 = arith.constant 0 : i32
    %c0_i32_1 = arith.constant 0 : i32
    return %c0_i32, %c0_i32_0 : i32, i32
  }
  func.func @transform_5(%arg0: i32) -> (i32, i32) {
    %c0_i32 = arith.constant 0 : i32
    %c0_i32_0 = arith.constant 0 : i32
    %c0_i32_1 = arith.constant 0 : i32
    return %c0_i32, %c0_i32_0 : i32, i32
  }
  func.func @transform_6(%arg0: i32) -> (i32, i32) {
    %c0_i32 = arith.constant 0 : i32
    %c0_i32_0 = arith.constant 0 : i32
    %c0_i32_1 = arith.constant 0 : i32
    return %c0_i32, %c0_i32_0 : i32, i32
  }
  func.func @transform_7(%arg0: i32) -> (i32, i32) {
    %c0_i32 = arith.constant 0 : i32
    %c0_i32_0 = arith.constant 0 : i32
    %c0_i32_1 = arith.constant 0 : i32
    return %c0_i32, %c0_i32_0 : i32, i32
  }
  func.func @transform_8(%arg0: i32) -> (i32, i32) {
    %c0_i32 = arith.constant 0 : i32
    %c0_i32_0 = arith.constant 0 : i32
    return %arg0, %c0_i32 : i32, i32
  }
}

module attributes {stable_mosaic.version = 11 : i64} {
  func.func @kernel(%arg0: i32, %arg1: memref<2xf32, #tpu.memory_space<smem>>, %arg2: memref<16x128xf32, #tpu.memory_space<vmem>>, %arg3: memref<128x128xbf16, #tpu.memory_space<vmem>>, %arg4: memref<1x128xf32, #tpu.memory_space<vmem>>, %arg5: memref<128x128xbf16, #tpu.memory_space<vmem>>, %arg6: memref<1x128xf32, #tpu.memory_space<vmem>>, %arg7: memref<128x128xbf16, #tpu.memory_space<vmem>>, %arg8: memref<1x128xf32, #tpu.memory_space<vmem>>, %arg9: memref<16x128xf32, #tpu.memory_space<vmem>>) attributes {dimension_semantics = [#tpu.dimension_semantics<parallel>], iteration_bounds = array<i64: 1>, scalar_prefetch = 0 : i64, scratch_operands = 0 : i64, tpu.core_type = #tpu.core_type<tc>, window_params = [{transform_indices = @transform_0, window_bounds = array<i64: 2>}, {transform_indices = @transform_1, window_bounds = array<i64: 16, 128>}, {pipeline_mode = #tpu.pipeline_mode<synchronous>, transform_indices = @transform_2, window_bounds = array<i64: 128, 128>}, {pipeline_mode = #tpu.pipeline_mode<synchronous>, transform_indices = @transform_3, window_bounds = array<i64: 1, 128>}, {pipeline_mode = #tpu.pipeline_mode<synchronous>, transform_indices = @transform_4, window_bounds = array<i64: 128, 128>}, {pipeline_mode = #tpu.pipeline_mode<synchronous>, transform_indices = @transform_5, window_bounds = array<i64: 1, 128>}, {pipeline_mode = #tpu.pipeline_mode<synchronous>, transform_indices = @transform_6, window_bounds = array<i64: 128, 128>}, {pipeline_mode = #tpu.pipeline_mode<synchronous>, transform_indices = @transform_7, window_bounds = array<i64: 1, 128>}, {transform_indices = @transform_8, window_bounds = array<i64: 16, 128>}]} {
    %c0 = arith.constant 0 : index
    %c0_0 = arith.constant 0 : index
    %0 = vector.load %arg2[%c0, %c0_0] : memref<16x128xf32, #tpu.memory_space<vmem>>, vector<16x128xf32>
    %c0_1 = arith.constant 0 : index
    %c0_2 = arith.constant 0 : index
    %1 = vector.load %arg3[%c0_1, %c0_2] : memref<128x128xbf16, #tpu.memory_space<vmem>>, vector<128x128xbf16>
    %c0_3 = arith.constant 0 : index
    %c0_4 = arith.constant 0 : index
    %2 = vector.load %arg4[%c0_3, %c0_4] : memref<1x128xf32, #tpu.memory_space<vmem>>, vector<1x128xf32>
    %3 = arith.truncf %0 : vector<16x128xf32> to vector<16x128xbf16>
    %cst = arith.constant dense<0.000000e+00> : vector<16x128xf32>
    %4 = tpu.matmul %3, %1, %cst {dimension_numbers = #tpu.dot_dimension_numbers<[1], [0], [0], [1], [0, 0, 1, 1], [], []>} : vector<16x128xbf16>, vector<128x128xbf16>, vector<16x128xf32> -> vector<16x128xf32>
    %5 = vector.broadcast %2 : vector<1x128xf32> to vector<16x128xf32>
    %6 = arith.addf %4, %5 : vector<16x128xf32>
    %c0_5 = arith.constant 0 : index
    %7 = memref.load %arg1[%c0_5] : memref<2xf32, #tpu.memory_space<smem>>
    %cst_6 = arith.constant 0.000000e+00 : f32
    %8 = vector.broadcast %cst_6 : f32 to vector<16x128xf32>
    %9 = arith.cmpf ogt, %6, %8 : vector<16x128xf32>
    %10 = vector.broadcast %7 : f32 to vector<16x128xf32>
    %11 = arith.mulf %10, %6 : vector<16x128xf32>
    %12 = arith.select %9, %6, %11 : vector<16x128xi1>, vector<16x128xf32>
    %13 = arith.addf %0, %12 : vector<16x128xf32>
    %c0_7 = arith.constant 0 : index
    %c0_8 = arith.constant 0 : index
    %14 = vector.load %arg5[%c0_7, %c0_8] : memref<128x128xbf16, #tpu.memory_space<vmem>>, vector<128x128xbf16>
    %c0_9 = arith.constant 0 : index
    %c0_10 = arith.constant 0 : index
    %15 = vector.load %arg6[%c0_9, %c0_10] : memref<1x128xf32, #tpu.memory_space<vmem>>, vector<1x128xf32>
    %16 = arith.truncf %13 : vector<16x128xf32> to vector<16x128xbf16>
    %cst_11 = arith.constant dense<0.000000e+00> : vector<16x128xf32>
    %17 = tpu.matmul %16, %14, %cst_11 {dimension_numbers = #tpu.dot_dimension_numbers<[1], [0], [0], [1], [0, 0, 1, 1], [], []>} : vector<16x128xbf16>, vector<128x128xbf16>, vector<16x128xf32> -> vector<16x128xf32>
    %18 = vector.broadcast %15 : vector<1x128xf32> to vector<16x128xf32>
    %19 = arith.addf %17, %18 : vector<16x128xf32>
    %c1 = arith.constant 1 : index
    %20 = memref.load %arg1[%c1] : memref<2xf32, #tpu.memory_space<smem>>
    %cst_12 = arith.constant 0.000000e+00 : f32
    %21 = vector.broadcast %cst_12 : f32 to vector<16x128xf32>
    %22 = arith.cmpf ogt, %19, %21 : vector<16x128xf32>
    %23 = vector.broadcast %20 : f32 to vector<16x128xf32>
    %24 = arith.mulf %23, %19 : vector<16x128xf32>
    %25 = arith.select %22, %19, %24 : vector<16x128xi1>, vector<16x128xf32>
    %26 = arith.addf %13, %25 : vector<16x128xf32>
    %c0_13 = arith.constant 0 : index
    %c0_14 = arith.constant 0 : index
    %27 = vector.load %arg7[%c0_13, %c0_14] : memref<128x128xbf16, #tpu.memory_space<vmem>>, vector<128x128xbf16>
    %c0_15 = arith.constant 0 : index
    %c0_16 = arith.constant 0 : index
    %28 = vector.load %arg8[%c0_15, %c0_16] : memref<1x128xf32, #tpu.memory_space<vmem>>, vector<1x128xf32>
    %29 = arith.truncf %26 : vector<16x128xf32> to vector<16x128xbf16>
    %cst_17 = arith.constant dense<0.000000e+00> : vector<16x128xf32>
    %30 = tpu.matmul %29, %27, %cst_17 {dimension_numbers = #tpu.dot_dimension_numbers<[1], [0], [0], [1], [0, 0, 1, 1], [], []>} : vector<16x128xbf16>, vector<128x128xbf16>, vector<16x128xf32> -> vector<16x128xf32>
    %31 = vector.broadcast %28 : vector<1x128xf32> to vector<16x128xf32>
    %32 = arith.addf %30, %31 : vector<16x128xf32>
    %c0_18 = arith.constant 0 : index
    %c0_19 = arith.constant 0 : index
    %33 = vector.load %arg9[%c0_18, %c0_19] : memref<16x128xf32, #tpu.memory_space<vmem>>, vector<16x128xf32>
    tpu.vector_store %arg9[%c0_18, %c0_19], %32 {strides = array<i32>} : memref<16x128xf32, #tpu.memory_space<vmem>>, vector<16x128xf32>,
    return
  }
  func.func @transform_0(%arg0: i32) -> i32 {
    %c0_i32 = arith.constant 0 : i32
    %c0_i32_0 = arith.constant 0 : i32
    return %c0_i32 : i32
  }
  func.func @transform_1(%arg0: i32) -> (i32, i32) {
    %c0_i32 = arith.constant 0 : i32
    %c0_i32_0 = arith.constant 0 : i32
    return %arg0, %c0_i32 : i32, i32
  }
  func.func @transform_2(%arg0: i32) -> (i32, i32) {
    %c0_i32 = arith.constant 0 : i32
    %c0_i32_0 = arith.constant 0 : i32
    %c0_i32_1 = arith.constant 0 : i32
    return %c0_i32, %c0_i32_0 : i32, i32
  }
  func.func @transform_3(%arg0: i32) -> (i32, i32) {
    %c0_i32 = arith.constant 0 : i32
    %c0_i32_0 = arith.constant 0 : i32
    %c0_i32_1 = arith.constant 0 : i32
    return %c0_i32, %c0_i32_0 : i32, i32
  }
  func.func @transform_4(%arg0: i32) -> (i32, i32) {
    %c0_i32 = arith.constant 0 : i32
    %c0_i32_0 = arith.constant 0 : i32
    %c0_i32_1 = arith.constant 0 : i32
    return %c0_i32, %c0_i32_0 : i32, i32
  }
  func.func @transform_5(%arg0: i32) -> (i32, i32) {
    %c0_i32 = arith.constant 0 : i32
    %c0_i32_0 = arith.constant 0 : i32
    %c0_i32_1 = arith.constant 0 : i32
    return %c0_i32, %c0_i32_0 : i32, i32
  }
  func.func @transform_6(%arg0: i32) -> (i32, i32) {
    %c0_i32 = arith.constant 0 : i32
    %c0_i32_0 = arith.constant 0 : i32
    %c0_i32_1 = arith.constant 0 : i32
    return %c0_i32, %c0_i32_0 : i32, i32
  }
  func.func @transform_7(%arg0: i32) -> (i32, i32) {
    %c0_i32 = arith.constant 0 : i32
    %c0_i32_0 = arith.constant 0 : i32
    %c0_i32_1 = arith.constant 0 : i32
    return %c0_i32, %c0_i32_0 : i32, i32
  }
  func.func @transform_8(%arg0: i32) -> (i32, i32) {
    %c0_i32 = arith.constant 0 : i32
    %c0_i32_0 = arith.constant 0 : i32
    return %arg0, %c0_i32 : i32, i32
  }
}

</mosaic_0001>

<bundles_post_ra>
// kernel: tpu_custom_call.1
= control target key start
LH: loop header
LB: loop body
LE: loop exit
PB: predicated region body
PF: predicated region fallthrough
CT: control target
= control target key end

     0   :  { %13 = vsyncpa [#allocation5], 0  ;;  %s765_s0 = inlined_call_operand.hbm [shape: f32[2], index: 0, kind: input, shape index: {}]   ;;  %s766_s1 = inlined_call_operand.hbm [shape: f32[16,128], index: 1, kind: input, shape index: {}]   ;;  %s767_s2 = inlined_call_operand.hbm [shape: bf16[128,128], index: 2, kind: input, shape index: {}]   ;;  %s768_s3 = inlined_call_operand.vmem [shape: f32[1,128], index: 3, kind: input, shape index: {}]   ;;  %s769_s4 = inlined_call_operand.hbm [shape: bf16[128,128], index: 4, kind: input, shape index: {}]   ;;  %s770_s5 = inlined_call_operand.vmem [shape: f32[1,128], index: 5, kind: input, shape index: {}]   ;;  %s771_s6 = inlined_call_operand.hbm [shape: bf16[128,128], index: 6, kind: input, shape index: {}]   ;;  %s772_s7 = inlined_call_operand.vmem [shape: f32[1,128], index: 7, kind: input, shape index: {}]   ;;  %s773_s8 = inlined_call_operand.hbm [shape: f32[16,128], index: 8, kind: output, shape index: {}]  }
   0x1   :  { %14 = vsyncpa [#allocation3], 0 }
   0x2   :  { %15 = vsyncpa [#allocation8], 0 }
   0x3   :  { %16 = vsyncpa [#allocation11], 0  ;;  %s44_s29 = sshll.u32 %s767_s2, 4  ;;  %s45_s29 = int_to_ptr.hbm [resolvable:$true] %s44_s29 }
   0x4   :  { %17 = vsyncpa [#allocation4], 0  ;;  %s677_s30 = smov [#allocation7]   ;;  %s23_s12 = sshll.u32 %s765_s0, 4  ;;  %s24_s12 = int_to_ptr.hbm [resolvable:$true] %s23_s12 }
   0x5   :  { %s46_s9 = sshll.u32 %s677_s30, 4  ;;  %s678_s13 = smov 64   ;;  %s47_s9 = int_to_ptr.vmem [resolvable:$true] %s46_s9 }
   0x6   :  { %s679_s14 = smov 4   ;;  %s680_s15 = smov [#allocation2]  }
   0x7   :  { %52 = dma.hbm_to_vmem [thread:$0]  %s45_s29, 1024, %s47_s9, [#allocation8], %s678_s13, %s678_s13, %s679_s14  }
   0x8   :  { %26 = dma.hbm_to_smem %s24_s12, 16, %s680_s15, [#allocation5]  }
   0x9   :  { %s31_s18 = sshll.u32 %s766_s1, 4  ;;  %s681_s2 = smov [#allocation6]   ;;  %s32_s18 = int_to_ptr.hbm [resolvable:$true] %s31_s18 }
   0xa   :  { %s33_s19 = sshll.u32 %s681_s2, 4  ;;  %s59_s22 = sshll.u32 %s769_s4, 4  ;;  %s34_s19 = int_to_ptr.vmem [resolvable:$true] %s33_s19  ;;  %s60_s22 = int_to_ptr.hbm [resolvable:$true] %s59_s22 }
   0xb   :  { %s682_s23 = smov 128   ;;  %s683_s0 = smov 8  }
   0xc   :  { %39 = dma.hbm_to_vmem [thread:$0]  %s32_s18, 256, %s34_s19, [#allocation3], %s682_s23, %s682_s23, %s683_s0  }
   0xd   :  { %s684_s24 = smov [#allocation9]   ;;  %s74_s1 = sshll.u32 %s771_s6, 4  ;;  %s75_s1 = int_to_ptr.hbm [resolvable:$true] %s74_s1 }
   0xe   :  { %s61_s25 = sshll.u32 %s684_s24, 4  ;;  %s685_s28 = smov [#allocation10]   ;;  %s62_s25 = int_to_ptr.vmem [resolvable:$true] %s61_s25 }
   0xf   :  { %67 = dma.hbm_to_vmem [thread:$0]  %s60_s22, 1024, %s62_s25, [#allocation8], %s678_s13, %s678_s13, %s679_s14  }
  0x10   :  { %s76_s29 = sshll.u32 %s685_s28, 4  ;;  %s77_s29 = int_to_ptr.vmem [resolvable:$true] %s76_s29 }
  0x11   :  { %82 = dma.hbm_to_vmem [thread:$0]  %s75_s1, 1024, %s77_s29, [#allocation11], %s678_s13, %s678_s13, %s679_s14  }
  0x12   :  { %667 = dma.done.wait [#allocation5], 16  }
  0x13   :  { %668 = vsyncadd [#allocation5], 4294967280 }
  0x14   :  { %669 = dma.done.wait [#allocation3], 256  }
  0x15   :  { %670 = vsyncadd [#allocation3], 4294967040 }
  0x16   :  { %671 = dma.done.wait [#allocation8], 2048  }
  0x17   :  { %672 = vsyncadd [#allocation8], 4294965248 }
  0x18   :  { %673 = dma.done.wait [#allocation11], 1024  }
  0x19   :  { %674 = vsyncadd [#allocation11], 4294966272 }
  0x1a   :  { %105 = sfence }
  0x1b   :  { %v505_v0 = vld [vmem:[#allocation7 + $0x38] sm:$0xff]  ;;  %v504_v1 = vld [vmem:[#allocation7 + $0x30] sm:$0xff]  ;;  %v503_v4 = vld [vmem:[#allocation7 + $0x28] sm:$0xff]  ;;  %s191_s4 = sld [smem:[#allocation2]]  ;;  %s385_s16 = sshll.u32 %s773_s8, 4  ;;  %s386_s16 = int_to_ptr.hbm [resolvable:$true] %s385_s16 }
  0x1c   :  { %177 = vmatpush.bf16.msra.mxu0 %v505_v0  ;;  %v513_v2 = vld [vmem:[#allocation9 + $0x38] sm:$0xff]  ;;  %v512_v3 = vld [vmem:[#allocation9 + $0x30] sm:$0xff]  ;;  %v511_v5 = vld [vmem:[#allocation9 + $0x28] sm:$0xff] }
  0x1d   :  { %270 = vmatpush.bf16.msra.mxu1 %v513_v2  ;;  %v502_v6 = vld [vmem:[#allocation7 + $0x20] sm:$0xff]  ;;  %v501_v8 = vld [vmem:[#allocation7 + $0x18] sm:$0xff]  ;;  %v500_v9 = vld [vmem:[#allocation7 + $0x10] sm:$0xff] }
  0x1e   :  { %v510_v7 = vld [vmem:[#allocation9 + $0x20] sm:$0xff]  ;;  %v499_v10 = vld [vmem:[#allocation7 + $0x8] sm:$0xff]  ;;  %v106_v12 = vld [vmem:[#allocation6] sm:$0xff] }
  0x1f   :  { %v498_v11 = vld [vmem:[#allocation7] sm:$0xff]  ;;  %v107_v13 = vld [vmem:[#allocation6 + $0x8] sm:$0xff]  ;;  %v508_v16 = vld [vmem:[#allocation9 + $0x10] sm:$0xff] }
  0x20   :  { %178 = vmatpush.bf16.msra.mxu0 %v504_v1  ;;  %v125_v14 = vpack.c.bf16 %v107_v13, %v106_v12  ;;  %v509_v15 = vld [vmem:[#allocation9 + $0x18] sm:$0xff]  ;;  %v507_v17 = vld [vmem:[#allocation9 + $0x8] sm:$0xff]  ;;  %v506_v18 = vld [vmem:[#allocation9] sm:$0xff] }
  0x21   :  { %271 = vmatpush.bf16.msra.mxu1 %v512_v3  ;;  %v521_v19 = vld [vmem:[#allocation10 + $0x38] sm:$0xff]  ;;  %v520_v20 = vld [vmem:[#allocation10 + $0x30] sm:$0xff]  ;;  %v519_v21 = vld [vmem:[#allocation10 + $0x28] sm:$0xff]  ;;  %v194_v26 = vstv %s191_s4 }
  0x22   :  { %363 = vmatpush.bf16.msra.mxu2 %v521_v19  ;;  %v518_v22 = vld [vmem:[#allocation10 + $0x20] sm:$0xff]  ;;  %v532_v23 = vld [vmem:[%s768_s3] ss:$0 sm:$0xff]  ;;  %v517_v36 = vld [vmem:[#allocation10 + $0x18] sm:$0xff]  ;;  %s465_s3 = sld [smem:[#allocation2 + $0x1]] }
  0x23   :  { %v516_v37 = vld [vmem:[#allocation10 + $0x10] sm:$0xff]  ;;  %v515_v38 = vld [vmem:[#allocation10 + $0x8] sm:$0xff]  ;;  %v514_v39 = vld [vmem:[#allocation10] sm:$0xff] }
  0x24   :  { %179 = vmatpush.bf16.msra.mxu0 %v503_v4  ;;  %v533_v40 = vld [vmem:[%s770_s5] ss:$0 sm:$0xff]  ;;  %s686_s5 = smov [#allocation12]  }
  0x25   :  { %272 = vmatpush.bf16.msra.mxu1 %v511_v5  ;;  %v534_v53 = vld [vmem:[%s772_s7] ss:$0 sm:$0xff]  ;;  %s383_s13 = sshll.u32 %s686_s5, 4  ;;  %s384_s13 = int_to_ptr.vmem [resolvable:$true] %s383_s13 }
  0x26   :  { %364 = vmatpush.bf16.msra.mxu2 %v520_v20 }
  0x28   :  { %180 = vmatpush.bf16.msra.mxu0 %v502_v6  ;;  %v287_v43 = vstv %s465_s3 }
  0x29   :  { %273 = vmatpush.bf16.msra.mxu1 %v510_v7 }
  0x2a   :  { %365 = vmatpush.bf16.msra.mxu2 %v519_v21 }
  0x2c   :  { %181 = vmatpush.bf16.msra.mxu0 %v501_v8 }
  0x2d   :  { %274 = vmatpush.bf16.msra.mxu1 %v509_v15 }
  0x2e   :  { %366 = vmatpush.bf16.msra.mxu2 %v518_v22 }
  0x30   :  { %182 = vmatpush.bf16.msra.mxu0 %v500_v9 }
  0x31   :  { %275 = vmatpush.bf16.msra.mxu1 %v508_v16 }
  0x32   :  { %367 = vmatpush.bf16.msra.mxu2 %v517_v36 }
  0x34   :  { %183 = vmatpush.bf16.msra.mxu0 %v499_v10 }
  0x35   :  { %276 = vmatpush.bf16.msra.mxu1 %v507_v17 }
  0x36   :  { %368 = vmatpush.bf16.msra.mxu2 %v516_v37 }
  0x38   :  { %184 = vmatpush.bf16.msra.mxu0 %v498_v11 }
  0x39   :  { %277 = vmatpush.bf16.msra.mxu1 %v506_v18 }
  0x3a   :  { %369 = vmatpush.bf16.msra.mxu2 %v515_v38 }
  0x3b   :  { %185 = vmatmul.bf16.vlgmr.msra.gmra.mxu0 %v125_v14 }
  0x3e   :  { %370 = vmatpush.bf16.msra.mxu2 %v514_v39 }
  0xb8   :  { %v186_v24 = vpop.f32.mrf.mxu0 }
  0xb9   :  { %v187_v25 = vadd.f32 %v532_v23, %v186_v24 }
  0xbb   :  { %v195_v27 = vmul.f32 %v194_v26, %v187_v25  ;;  %vm192_vm0 = vcmp.gt.f32.partialorder %v187_v25, 0.0 }
  0xbd   :  { %v197_v31 = vsel %vm192_vm0, %v187_v25, %v195_v27 }
  0xbe   :  { %v199_v33 = vadd.f32 %v197_v31, %v106_v12 }
  0xc0   :  { %v188_v28 = vpop.f32.mrf.mxu0 }
  0xc1   :  { %v189_v29 = vadd.f32 %v532_v23, %v188_v28 }
  0xc3   :  { %vm193_vm1 = vcmp.gt.f32.partialorder %v189_v29, 0.0  ;;  %v196_v30 = vmul.f32 %v194_v26, %v189_v29 }
  0xc5   :  { %v198_v32 = vsel %vm193_vm1, %v189_v29, %v196_v30 }
  0xc6   :  { %v200_v34 = vadd.f32 %v198_v32, %v107_v13 }
  0xc8   :  { %v218_v35 = vpack.c.bf16 %v200_v34, %v199_v33 }
  0xca   :  { %278 = vmatmul.bf16.vlgmr.msra.gmra.mxu1 %v218_v35 }
 0x147   :  { %v279_v41 = vpop.f32.mrf.mxu1 }
 0x148   :  { %v280_v42 = vadd.f32 %v533_v40, %v279_v41 }
 0x14a   :  { %v288_v44 = vmul.f32 %v287_v43, %v280_v42  ;;  %vm285_vm2 = vcmp.gt.f32.partialorder %v280_v42, 0.0 }
 0x14c   :  { %v290_v48 = vsel %vm285_vm2, %v280_v42, %v288_v44 }
 0x14d   :  { %v292_v50 = vadd.f32 %v290_v48, %v199_v33 }
 0x14f   :  { %v281_v45 = vpop.f32.mrf.mxu1 }
 0x150   :  { %v282_v46 = vadd.f32 %v533_v40, %v281_v45 }
 0x152   :  { %vm286_vm3 = vcmp.gt.f32.partialorder %v282_v46, 0.0  ;;  %v289_v47 = vmul.f32 %v287_v43, %v282_v46 }
 0x154   :  { %v291_v49 = vsel %vm286_vm3, %v282_v46, %v289_v47 }
 0x155   :  { %v293_v51 = vadd.f32 %v291_v49, %v200_v34 }
 0x157   :  { %v311_v52 = vpack.c.bf16 %v293_v51, %v292_v50 }
 0x159   :  { %371 = vmatmul.bf16.vlgmr.msra.gmra.mxu2 %v311_v52 }
 0x1dc   :  { %v372_v54 = vpop.f32.mrf.mxu2 }
 0x1dd   :  { %v373_v55 = vadd.f32 %v534_v53, %v372_v54 }
 0x1df   :  { %377 = vst [vmem:[#allocation12] sm:$0xff] %v373_v55 }
 0x1e4   :  { %v374_v56 = vpop.f32.mrf.mxu2 }
 0x1e5   :  { %v375_v57 = vadd.f32 %v534_v53, %v374_v56 }
 0x1e7   :  { %378 = vst [vmem:[#allocation12 + $0x8] sm:$0xff] %v375_v57 }
 0x1e8   :  { %391 = dma.vmem_to_hbm [thread:$0]  %s384_s13, 256, %s386_s16, [#allocation4], %s682_s23, %s682_s23, %s683_s0  }
 0x1e9   :  { %675 = dma.done.wait [#allocation4], 256  }
 0x1ea   :  { %676 = vsyncadd [#allocation4], 4294967040 }
 0x1eb   :  { %396 = vsyncpa [#allocation3], 1 }
 0x1ec   :  { %397 = vsyncpa [#allocation8], 1 }
 0x1ed   :  { %398 = vsyncpa [#allocation11], 1 }
 0x1ee   :  { %399 = vsyncpa [#allocation4], 1 }
 0x1ef   :  { %400 = vsyncpa [#allocation5], 1 }

// kernel: tpu_custom_call.1
= control target key start
LH: loop header
LB: loop body
LE: loop exit
PB: predicated region body
PF: predicated region fallthrough
CT: control target
= control target key end

     0   :  { %13 = vsyncpa [#allocation5], 0  ;;  %s765_s0 = inlined_call_operand.hbm [shape: f32[2], index: 0, kind: input, shape index: {}]   ;;  %s766_s1 = inlined_call_operand.hbm [shape: f32[16,128], index: 1, kind: input, shape index: {}]   ;;  %s767_s2 = inlined_call_operand.hbm [shape: bf16[128,128], index: 2, kind: input, shape index: {}]   ;;  %s768_s3 = inlined_call_operand.vmem [shape: f32[1,128], index: 3, kind: input, shape index: {}]   ;;  %s769_s4 = inlined_call_operand.hbm [shape: bf16[128,128], index: 4, kind: input, shape index: {}]   ;;  %s770_s5 = inlined_call_operand.vmem [shape: f32[1,128], index: 5, kind: input, shape index: {}]   ;;  %s771_s6 = inlined_call_operand.hbm [shape: bf16[128,128], index: 6, kind: input, shape index: {}]   ;;  %s772_s7 = inlined_call_operand.vmem [shape: f32[1,128], index: 7, kind: input, shape index: {}]   ;;  %s773_s8 = inlined_call_operand.hbm [shape: f32[16,128], index: 8, kind: output, shape index: {}]  }
   0x1   :  { %14 = vsyncpa [#allocation3], 0 }
   0x2   :  { %15 = vsyncpa [#allocation8], 0 }
   0x3   :  { %16 = vsyncpa [#allocation11], 0  ;;  %s44_s29 = sshll.u32 %s767_s2, 4  ;;  %s45_s29 = int_to_ptr.hbm [resolvable:$true] %s44_s29 }
   0x4   :  { %17 = vsyncpa [#allocation4], 0  ;;  %s677_s30 = smov [#allocation7]   ;;  %s23_s12 = sshll.u32 %s765_s0, 4  ;;  %s24_s12 = int_to_ptr.hbm [resolvable:$true] %s23_s12 }
   0x5   :  { %s46_s9 = sshll.u32 %s677_s30, 4  ;;  %s678_s13 = smov 64   ;;  %s47_s9 = int_to_ptr.vmem [resolvable:$true] %s46_s9 }
   0x6   :  { %s679_s14 = smov 4   ;;  %s680_s15 = smov [#allocation2]  }
   0x7   :  { %52 = dma.hbm_to_vmem [thread:$0]  %s45_s29, 1024, %s47_s9, [#allocation8], %s678_s13, %s678_s13, %s679_s14  }
   0x8   :  { %26 = dma.hbm_to_smem %s24_s12, 16, %s680_s15, [#allocation5]  }
   0x9   :  { %s31_s18 = sshll.u32 %s766_s1, 4  ;;  %s681_s2 = smov [#allocation6]   ;;  %s32_s18 = int_to_ptr.hbm [resolvable:$true] %s31_s18 }
   0xa   :  { %s33_s19 = sshll.u32 %s681_s2, 4  ;;  %s59_s22 = sshll.u32 %s769_s4, 4  ;;  %s34_s19 = int_to_ptr.vmem [resolvable:$true] %s33_s19  ;;  %s60_s22 = int_to_ptr.hbm [resolvable:$true] %s59_s22 }
   0xb   :  { %s682_s23 = smov 128   ;;  %s683_s0 = smov 8  }
   0xc   :  { %39 = dma.hbm_to_vmem [thread:$0]  %s32_s18, 256, %s34_s19, [#allocation3], %s682_s23, %s682_s23, %s683_s0  }
   0xd   :  { %s684_s24 = smov [#allocation9]   ;;  %s74_s1 = sshll.u32 %s771_s6, 4  ;;  %s75_s1 = int_to_ptr.hbm [resolvable:$true] %s74_s1 }
   0xe   :  { %s61_s25 = sshll.u32 %s684_s24, 4  ;;  %s685_s28 = smov [#allocation10]   ;;  %s62_s25 = int_to_ptr.vmem [resolvable:$true] %s61_s25 }
   0xf   :  { %67 = dma.hbm_to_vmem [thread:$0]  %s60_s22, 1024, %s62_s25, [#allocation8], %s678_s13, %s678_s13, %s679_s14  }
  0x10   :  { %s76_s29 = sshll.u32 %s685_s28, 4  ;;  %s77_s29 = int_to_ptr.vmem [resolvable:$true] %s76_s29 }
  0x11   :  { %82 = dma.hbm_to_vmem [thread:$0]  %s75_s1, 1024, %s77_s29, [#allocation11], %s678_s13, %s678_s13, %s679_s14  }
  0x12   :  { %667 = dma.done.wait [#allocation5], 16  }
  0x13   :  { %668 = vsyncadd [#allocation5], 4294967280 }
  0x14   :  { %669 = dma.done.wait [#allocation3], 256  }
  0x15   :  { %670 = vsyncadd [#allocation3], 4294967040 }
  0x16   :  { %671 = dma.done.wait [#allocation8], 2048  }
  0x17   :  { %672 = vsyncadd [#allocation8], 4294965248 }
  0x18   :  { %673 = dma.done.wait [#allocation11], 1024  }
  0x19   :  { %674 = vsyncadd [#allocation11], 4294966272 }
  0x1a   :  { %105 = sfence }
  0x1b   :  { %v505_v0 = vld [vmem:[#allocation7 + $0x38] sm:$0xff]  ;;  %v504_v1 = vld [vmem:[#allocation7 + $0x30] sm:$0xff]  ;;  %v503_v4 = vld [vmem:[#allocation7 + $0x28] sm:$0xff]  ;;  %s191_s4 = sld [smem:[#allocation2]]  ;;  %s385_s16 = sshll.u32 %s773_s8, 4  ;;  %s386_s16 = int_to_ptr.hbm [resolvable:$true] %s385_s16 }
  0x1c   :  { %177 = vmatpush.bf16.msra.mxu0 %v505_v0  ;;  %v513_v2 = vld [vmem:[#allocation9 + $0x38] sm:$0xff]  ;;  %v512_v3 = vld [vmem:[#allocation9 + $0x30] sm:$0xff]  ;;  %v511_v5 = vld [vmem:[#allocation9 + $0x28] sm:$0xff] }
  0x1d   :  { %270 = vmatpush.bf16.msra.mxu1 %v513_v2  ;;  %v502_v6 = vld [vmem:[#allocation7 + $0x20] sm:$0xff]  ;;  %v501_v8 = vld [vmem:[#allocation7 + $0x18] sm:$0xff]  ;;  %v500_v9 = vld [vmem:[#allocation7 + $0x10] sm:$0xff] }
  0x1e   :  { %v510_v7 = vld [vmem:[#allocation9 + $0x20] sm:$0xff]  ;;  %v499_v10 = vld [vmem:[#allocation7 + $0x8] sm:$0xff]  ;;  %v106_v12 = vld [vmem:[#allocation6] sm:$0xff] }
  0x1f   :  { %v498_v11 = vld [vmem:[#allocation7] sm:$0xff]  ;;  %v107_v13 = vld [vmem:[#allocation6 + $0x8] sm:$0xff]  ;;  %v508_v16 = vld [vmem:[#allocation9 + $0x10] sm:$0xff] }
  0x20   :  { %178 = vmatpush.bf16.msra.mxu0 %v504_v1  ;;  %v125_v14 = vpack.c.bf16 %v107_v13, %v106_v12  ;;  %v509_v15 = vld [vmem:[#allocation9 + $0x18] sm:$0xff]  ;;  %v507_v17 = vld [vmem:[#allocation9 + $0x8] sm:$0xff]  ;;  %v506_v18 = vld [vmem:[#allocation9] sm:$0xff] }
  0x21   :  { %271 = vmatpush.bf16.msra.mxu1 %v512_v3  ;;  %v521_v19 = vld [vmem:[#allocation10 + $0x38] sm:$0xff]  ;;  %v520_v20 = vld [vmem:[#allocation10 + $0x30] sm:$0xff]  ;;  %v519_v21 = vld [vmem:[#allocation10 + $0x28] sm:$0xff]  ;;  %v194_v26 = vstv %s191_s4 }
  0x22   :  { %363 = vmatpush.bf16.msra.mxu2 %v521_v19  ;;  %v518_v22 = vld [vmem:[#allocation10 + $0x20] sm:$0xff]  ;;  %v532_v23 = vld [vmem:[%s768_s3] ss:$0 sm:$0xff]  ;;  %v517_v36 = vld [vmem:[#allocation10 + $0x18] sm:$0xff]  ;;  %s465_s3 = sld [smem:[#allocation2 + $0x1]] }
  0x23   :  { %v516_v37 = vld [vmem:[#allocation10 + $0x10] sm:$0xff]  ;;  %v515_v38 = vld [vmem:[#allocation10 + $0x8] sm:$0xff]  ;;  %v514_v39 = vld [vmem:[#allocation10] sm:$0xff] }
  0x24   :  { %179 = vmatpush.bf16.msra.mxu0 %v503_v4  ;;  %v533_v40 = vld [vmem:[%s770_s5] ss:$0 sm:$0xff]  ;;  %s686_s5 = smov [#allocation12]  }
  0x25   :  { %272 = vmatpush.bf16.msra.mxu1 %v511_v5  ;;  %v534_v53 = vld [vmem:[%s772_s7] ss:$0 sm:$0xff]  ;;  %s383_s13 = sshll.u32 %s686_s5, 4  ;;  %s384_s13 = int_to_ptr.vmem [resolvable:$true] %s383_s13 }
  0x26   :  { %364 = vmatpush.bf16.msra.mxu2 %v520_v20 }
  0x28   :  { %180 = vmatpush.bf16.msra.mxu0 %v502_v6  ;;  %v287_v43 = vstv %s465_s3 }
  0x29   :  { %273 = vmatpush.bf16.msra.mxu1 %v510_v7 }
  0x2a   :  { %365 = vmatpush.bf16.msra.mxu2 %v519_v21 }
  0x2c   :  { %181 = vmatpush.bf16.msra.mxu0 %v501_v8 }
  0x2d   :  { %274 = vmatpush.bf16.msra.mxu1 %v509_v15 }
  0x2e   :  { %366 = vmatpush.bf16.msra.mxu2 %v518_v22 }
  0x30   :  { %182 = vmatpush.bf16.msra.mxu0 %v500_v9 }
  0x31   :  { %275 = vmatpush.bf16.msra.mxu1 %v508_v16 }
  0x32   :  { %367 = vmatpush.bf16.msra.mxu2 %v517_v36 }
  0x34   :  { %183 = vmatpush.bf16.msra.mxu0 %v499_v10 }
  0x35   :  { %276 = vmatpush.bf16.msra.mxu1 %v507_v17 }
  0x36   :  { %368 = vmatpush.bf16.msra.mxu2 %v516_v37 }
  0x38   :  { %184 = vmatpush.bf16.msra.mxu0 %v498_v11 }
  0x39   :  { %277 = vmatpush.bf16.msra.mxu1 %v506_v18 }
  0x3a   :  { %369 = vmatpush.bf16.msra.mxu2 %v515_v38 }
  0x3b   :  { %185 = vmatmul.bf16.vlgmr.msra.gmra.mxu0 %v125_v14 }
  0x3e   :  { %370 = vmatpush.bf16.msra.mxu2 %v514_v39 }
  0xb8   :  { %v186_v24 = vpop.f32.mrf.mxu0 }
  0xb9   :  { %v187_v25 = vadd.f32 %v532_v23, %v186_v24 }
  0xbb   :  { %v195_v27 = vmul.f32 %v194_v26, %v187_v25  ;;  %vm192_vm0 = vcmp.gt.f32.partialorder %v187_v25, 0.0 }
  0xbd   :  { %v197_v31 = vsel %vm192_vm0, %v187_v25, %v195_v27 }
  0xbe   :  { %v199_v33 = vadd.f32 %v197_v31, %v106_v12 }
  0xc0   :  { %v188_v28 = vpop.f32.mrf.mxu0 }
  0xc1   :  { %v189_v29 = vadd.f32 %v532_v23, %v188_v28 }
  0xc3   :  { %vm193_vm1 = vcmp.gt.f32.partialorder %v189_v29, 0.0  ;;  %v196_v30 = vmul.f32 %v194_v26, %v189_v29 }
  0xc5   :  { %v198_v32 = vsel %vm193_vm1, %v189_v29, %v196_v30 }
  0xc6   :  { %v200_v34 = vadd.f32 %v198_v32, %v107_v13 }
  0xc8   :  { %v218_v35 = vpack.c.bf16 %v200_v34, %v199_v33 }
  0xca   :  { %278 = vmatmul.bf16.vlgmr.msra.gmra.mxu1 %v218_v35 }
 0x147   :  { %v279_v41 = vpop.f32.mrf.mxu1 }
 0x148   :  { %v280_v42 = vadd.f32 %v533_v40, %v279_v41 }
 0x14a   :  { %v288_v44 = vmul.f32 %v287_v43, %v280_v42  ;;  %vm285_vm2 = vcmp.gt.f32.partialorder %v280_v42, 0.0 }
 0x14c   :  { %v290_v48 = vsel %vm285_vm2, %v280_v42, %v288_v44 }
 0x14d   :  { %v292_v50 = vadd.f32 %v290_v48, %v199_v33 }
 0x14f   :  { %v281_v45 = vpop.f32.mrf.mxu1 }
 0x150   :  { %v282_v46 = vadd.f32 %v533_v40, %v281_v45 }
 0x152   :  { %vm286_vm3 = vcmp.gt.f32.partialorder %v282_v46, 0.0  ;;  %v289_v47 = vmul.f32 %v287_v43, %v282_v46 }
 0x154   :  { %v291_v49 = vsel %vm286_vm3, %v282_v46, %v289_v47 }
 0x155   :  { %v293_v51 = vadd.f32 %v291_v49, %v200_v34 }
 0x157   :  { %v311_v52 = vpack.c.bf16 %v293_v51, %v292_v50 }
 0x159   :  { %371 = vmatmul.bf16.vlgmr.msra.gmra.mxu2 %v311_v52 }
 0x1dc   :  { %v372_v54 = vpop.f32.mrf.mxu2 }
 0x1dd   :  { %v373_v55 = vadd.f32 %v534_v53, %v372_v54 }
 0x1df   :  { %377 = vst [vmem:[#allocation12] sm:$0xff] %v373_v55 }
 0x1e4   :  { %v374_v56 = vpop.f32.mrf.mxu2 }
 0x1e5   :  { %v375_v57 = vadd.f32 %v534_v53, %v374_v56 }
 0x1e7   :  { %378 = vst [vmem:[#allocation12 + $0x8] sm:$0xff] %v375_v57 }
 0x1e8   :  { %391 = dma.vmem_to_hbm [thread:$0]  %s384_s13, 256, %s386_s16, [#allocation4], %s682_s23, %s682_s23, %s683_s0  }
 0x1e9   :  { %675 = dma.done.wait [#allocation4], 256  }
 0x1ea   :  { %676 = vsyncadd [#allocation4], 4294967040 }
 0x1eb   :  { %396 = vsyncpa [#allocation3], 1 }
 0x1ec   :  { %397 = vsyncpa [#allocation8], 1 }
 0x1ed   :  { %398 = vsyncpa [#allocation11], 1 }
 0x1ee   :  { %399 = vsyncpa [#allocation4], 1 }
 0x1ef   :  { %400 = vsyncpa [#allocation5], 1 }

</bundles_post_ra>
